<compile_context>
chip_gen: v5e
topology: v5e:2x2
jax: 0.10.0
libtpu: 0.0.40
codegen_flags: <defaults>
</compile_context>

<pallas_src>
import math

import jax
import jax.numpy as jnp
from jax.experimental import pallas as pl
from jax.experimental.pallas import tpu as pltpu

MAX_VALUE = 2.0
EXPONENT = 10.0
THRESHOLD = 1e-7
LOG_EXPONENT = math.log(EXPONENT)


def _round_up(v, m):
    return ((v + m - 1) // m) * m


def _noise_head_kernel(x_ref, w_ref, b_ref, o_ref):
    # x_ref: (tm, f*K) activations, w_ref: (f*K, f*N) block-diag weight (resident),
    # b_ref: (1, f*N) bias (resident), o_ref: (tm, f*N) output tile.
    y = jnp.dot(x_ref[...], w_ref[...], preferred_element_type=jnp.float32)
    y = y + b_ref[...]
    # modified_sigmoid: max * sigmoid(y)**ln(10) + thr
    #                == max * exp(-ln(10) * log1p(exp(-y))) + thr   (exact)
    out = MAX_VALUE * jnp.exp(-LOG_EXPONENT * jnp.log1p(jnp.exp(-y))) + THRESHOLD
    o_ref[...] = out.astype(o_ref.dtype)


def noise_head_forward(x, weight, bias, *, tile_m=2048, out_dtype=jnp.float32):
    """Pallas implementation of NoiseHead.forward.

    Args:
      x:      (B, T, in_size) activations (out_mlp_final).
      weight: (noise_filter_bank, in_size) — PyTorch nn.Linear weight layout.
      bias:   (noise_filter_bank,)
      tile_m: max folded rows processed per grid step.
      out_dtype: output dtype (f32 by default; bf16 halves output HBM traffic
                 if downstream tolerates it).
    Returns:
      (B, T, noise_filter_bank) in out_dtype.
    """
    B, T, K = x.shape
    N = weight.shape[0]
    M = B * T

    # Fold f logical rows into one lane-dense 128-wide output row when N
    # divides 128 (block-diagonal weight trick).  No padding anywhere.
    fold = 1
    if N < 128 and 128 % N == 0 and M % (128 // N) == 0:
        fold = 128 // N
    Kf, Nf, Mf = fold * K, fold * N, M // fold

    x2d = x.reshape(Mf, Kf)                        # contiguous view, no copy

    # NOTE: if weight/bias are constant across calls, hoist this prep out of
    # the per-call path.
    w_t = weight.T.astype(x.dtype)                 # (K, N)
    if fold > 1:
        w_t = jnp.kron(jnp.eye(fold, dtype=w_t.dtype), w_t)   # (f*K, f*N) block-diag
    b2d = jnp.tile(bias.astype(jnp.float32), (fold,)).reshape(1, Nf)

    # Row tile: multiple of 8 (f32 sublane rule), capped at tile_m; aim for
    # >= 2 grid steps when there is enough work (v7x megacore sharding).
    tm = min(tile_m, _round_up(Mf, 8))
    if Mf > 8 and pl.cdiv(Mf, tm) < 2:
        tm = _round_up(pl.cdiv(Mf, 2), 8)
    grid = (pl.cdiv(Mf, tm),)

    in_itemsize = jnp.dtype(x.dtype).itemsize
    out_itemsize = jnp.dtype(out_dtype).itemsize
    cost = pl.CostEstimate(
        flops=2 * Mf * Kf * Nf,
        transcendentals=2 * M * N,                 # exp + log1p per output element
        bytes_accessed=(Mf * Kf * in_itemsize      # x in
                        + Kf * Nf * in_itemsize    # weight in (resident, tiny)
                        + Nf * 4                   # bias in
                        + Mf * Nf * out_itemsize), # out
    )

    out2d = pl.pallas_call(
        _noise_head_kernel,
        out_shape=jax.ShapeDtypeStruct((Mf, Nf), out_dtype),
        grid_spec=pltpu.PrefetchScalarGridSpec(
            num_scalar_prefetch=0,
            grid=grid,
            in_specs=[
                pl.BlockSpec((tm, Kf), lambda i: (i, 0)),      # x tiles stream
                pl.BlockSpec((Kf, Nf), lambda i: (0, 0)),      # weight resident
                pl.BlockSpec((1, Nf), lambda i: (0, 0)),       # bias resident
            ],
            out_specs=pl.BlockSpec((tm, Nf), lambda i: (i, 0)),
        ),
        compiler_params=pltpu.CompilerParams(
            dimension_semantics=("parallel",),
            vmem_limit_bytes=32 * 1024 * 1024,
        ),
        cost_estimate=cost,
    )(x2d, w_t, b2d)

    # (Mf, f*N) -> (B, T, N): metadata-only reshape, no slice, no copy.
    return out2d.reshape(B, T, N)


def reference_forward(x, weight, bias):
    # Direct transcription of the PyTorch module: Linear -> modified_sigmoid.
    y = jnp.einsum("btk,nk->btn", x, weight) + bias
    sig = jax.nn.sigmoid(y)
    return MAX_VALUE * jnp.power(sig, LOG_EXPONENT) + THRESHOLD


if __name__ == "__main__":
    # Small shapes consistent with the module:
    # (batch, seq, in_size) -> (batch, seq, noise_filter_bank)
    B, T = 2, 8
    in_size = 32
    noise_filter_bank = 64

    key = jax.random.PRNGKey(0)
    kx, kw, kb = jax.random.split(key, 3)

    x = jax.random.normal(kx, (B, T, in_size), dtype=jnp.float32)
    # Deterministic synthetic parameters (nn.Linear(in_size, noise_filter_bank) shapes).
    weight = jax.random.normal(kw, (noise_filter_bank, in_size), dtype=jnp.float32) * 0.1
    bias = jax.random.normal(kb, (noise_filter_bank,), dtype=jnp.float32) * 0.1

    out = noise_head_forward(x, weight, bias)
    out = jax.block_until_ready(out)

    ref = reference_forward(x, weight, bias)
    assert out.shape == (B, T, noise_filter_bank)
    assert jnp.allclose(out, ref, atol=1e-5, rtol=1e-5), "mismatch vs reference"

    print("KERNEL_OK")
</pallas_src>

<mosaic_0001>
module attributes {stable_mosaic.version = 11 : i64} {
  func.func @_noise_head_kernel(%arg0: i32, %arg1: memref<8x64xf32, #tpu.memory_space<vmem>>, %arg2: memref<64x128xf32, #tpu.memory_space<vmem>>, %arg3: memref<1x128xf32, #tpu.memory_space<vmem>>, %arg4: memref<8x128xf32, #tpu.memory_space<vmem>>) attributes {dimension_semantics = [#tpu.dimension_semantics<parallel>], iteration_bounds = array<i64: 1>, scalar_prefetch = 0 : i64, scratch_operands = 0 : i64, tpu.core_type = #tpu.core_type<tc>, window_params = [{transform_indices = @transform_0, window_bounds = array<i64: 8, 64>}, {pipeline_mode = #tpu.pipeline_mode<synchronous>, transform_indices = @transform_1, window_bounds = array<i64: 64, 128>}, {pipeline_mode = #tpu.pipeline_mode<synchronous>, transform_indices = @transform_2, window_bounds = array<i64: 1, 128>}, {transform_indices = @transform_3, window_bounds = array<i64: 8, 128>}]} {
    %c0 = arith.constant 0 : index
    %c0_0 = arith.constant 0 : index
    %0 = vector.load %arg1[%c0, %c0_0] : memref<8x64xf32, #tpu.memory_space<vmem>>, vector<8x64xf32>
    %c0_1 = arith.constant 0 : index
    %c0_2 = arith.constant 0 : index
    %1 = vector.load %arg2[%c0_1, %c0_2] : memref<64x128xf32, #tpu.memory_space<vmem>>, vector<64x128xf32>
    %cst = arith.constant dense<0.000000e+00> : vector<8x128xf32>
    %2 = tpu.matmul %0, %1, %cst {dimension_numbers = #tpu.dot_dimension_numbers<[1], [0], [0], [1], [0, 0, 1, 1], [], []>} : vector<8x64xf32>, vector<64x128xf32>, vector<8x128xf32> -> vector<8x128xf32>
    %c0_3 = arith.constant 0 : index
    %c0_4 = arith.constant 0 : index
    %3 = vector.load %arg3[%c0_3, %c0_4] : memref<1x128xf32, #tpu.memory_space<vmem>>, vector<1x128xf32>
    %4 = vector.broadcast %3 : vector<1x128xf32> to vector<8x128xf32>
    %5 = arith.addf %2, %4 : vector<8x128xf32>
    %cst_5 = arith.constant 0.000000e+00 : f32
    %6 = vector.broadcast %cst_5 : f32 to vector<8x128xf32>
    %7 = arith.subf %6, %5 : vector<8x128xf32>
    %8 = math.exp %7 : vector<8x128xf32>
    %9 = math.log1p %8 : vector<8x128xf32>
    %cst_6 = arith.constant -2.30258512 : f32
    %10 = vector.broadcast %cst_6 : f32 to vector<8x128xf32>
    %11 = arith.mulf %10, %9 : vector<8x128xf32>
    %12 = math.exp %11 : vector<8x128xf32>
    %cst_7 = arith.constant 2.000000e+00 : f32
    %13 = vector.broadcast %cst_7 : f32 to vector<8x128xf32>
    %14 = arith.mulf %13, %12 : vector<8x128xf32>
    %cst_8 = arith.constant 1.000000e-07 : f32
    %15 = vector.broadcast %cst_8 : f32 to vector<8x128xf32>
    %16 = arith.addf %14, %15 : vector<8x128xf32>
    %c0_9 = arith.constant 0 : index
    %c0_10 = arith.constant 0 : index
    %17 = vector.load %arg4[%c0_9, %c0_10] : memref<8x128xf32, #tpu.memory_space<vmem>>, vector<8x128xf32>
    tpu.vector_store %arg4[%c0_9, %c0_10], %16 {strides = array<i32>} : memref<8x128xf32, #tpu.memory_space<vmem>>, vector<8x128xf32>,
    return
  }
  func.func @transform_0(%arg0: i32) -> (i32, i32) {
    %c0_i32 = arith.constant 0 : i32
    %c0_i32_0 = arith.constant 0 : i32
    return %arg0, %c0_i32 : i32, i32
  }
  func.func @transform_1(%arg0: i32) -> (i32, i32) {
    %c0_i32 = arith.constant 0 : i32
    %c0_i32_0 = arith.constant 0 : i32
    %c0_i32_1 = arith.constant 0 : i32
    return %c0_i32, %c0_i32_0 : i32, i32
  }
  func.func @transform_2(%arg0: i32) -> (i32, i32) {
    %c0_i32 = arith.constant 0 : i32
    %c0_i32_0 = arith.constant 0 : i32
    %c0_i32_1 = arith.constant 0 : i32
    return %c0_i32, %c0_i32_0 : i32, i32
  }
  func.func @transform_3(%arg0: i32) -> (i32, i32) {
    %c0_i32 = arith.constant 0 : i32
    %c0_i32_0 = arith.constant 0 : i32
    return %arg0, %c0_i32 : i32, i32
  }
}

</mosaic_0001>

<bundles_post_ra>
// kernel: tpu_custom_call.1
= control target key start
LH: loop header
LB: loop body
LE: loop exit
PB: predicated region body
PF: predicated region fallthrough
CT: control target
= control target key end

     0   :  { %8 = vsyncpa [#allocation3], 0  ;;  %s246_s0 = inlined_call_operand.hbm [shape: f32[8,64], index: 0, kind: input, shape index: {}]   ;;  %s247_s1 = inlined_call_operand.hbm [shape: f32[64,128], index: 1, kind: input, shape index: {}]   ;;  %s248_s2 = inlined_call_operand.vmem [shape: f32[1,128], index: 2, kind: input, shape index: {}]   ;;  %s249_s3 = inlined_call_operand.hbm [shape: f32[8,128], index: 3, kind: output, shape index: {}]  }
   0x1   :  { %9 = vsyncpa [#allocation6], 0 }
   0x2   :  { %10 = vsyncpa [#allocation4], 0  ;;  %s16_s14 = sshll.u32 %s246_s0, 4  ;;  %s209_s15 = smov [#allocation2]   ;;  %s17_s14 = int_to_ptr.hbm [resolvable:$true] %s16_s14 }
   0x3   :  { %s18_s16 = sshll.u32 %s209_s15, 4  ;;  %s26_s19 = sshll.u32 %s247_s1, 4  ;;  %s19_s16 = int_to_ptr.vmem [resolvable:$true] %s18_s16  ;;  %s27_s19 = int_to_ptr.hbm [resolvable:$true] %s26_s19 }
   0x4   :  { %21 = dma.hbm_to_vmem [thread:$0]  %s17_s14, 128, %s19_s16, [#allocation3]  }
   0x5   :  { %s210_s20 = smov [#allocation5]   ;;  %s211_s22 = smov 128  }
   0x6   :  { %s28_s21 = sshll.u32 %s210_s20, 4  ;;  %s212_s23 = smov 8   ;;  %s29_s21 = int_to_ptr.vmem [resolvable:$true] %s28_s21 }
   0x7   :  { %34 = dma.hbm_to_vmem [thread:$0]  %s27_s19, 1024, %s29_s21, [#allocation6], %s211_s22, %s211_s22, %s212_s23  }
   0x8   :  { %203 = dma.done.wait [#allocation3], 128  }
   0x9   :  { %204 = vsyncadd [#allocation3], 4294967168 }
   0xa   :  { %205 = dma.done.wait [#allocation6], 1024  }
   0xb   :  { %206 = vsyncadd [#allocation6], 4294966272  ;;  %v53_v0 = vld [vmem:[#allocation5 + $0x38] sm:$0xff]  ;;  %v52_v1 = vld [vmem:[#allocation5 + $0x30] sm:$0xff]  ;;  %vm58_vm0 = vcmask 523264   ;;  %s107_s27 = sshll.u32 %s249_s3, 4  ;;  %s108_s27 = int_to_ptr.hbm [resolvable:$true] %s107_s27 }
   0xc   :  { %70 = vmatpush.msra.mxu0 %v53_v0  ;;  %v51_v2 = vld [vmem:[#allocation5 + $0x28] sm:$0xff]  ;;  %v50_v3 = vld [vmem:[#allocation5 + $0x20] sm:$0xff]  ;;  %v49_v4 = vld [vmem:[#allocation5 + $0x18] sm:$0xff] }
   0xd   :  { %v48_v5 = vld [vmem:[#allocation5 + $0x10] sm:$0xff]  ;;  %v47_v6 = vld [vmem:[#allocation5 + $0x8] sm:$0xff]  ;;  %v46_v7 = vld [vmem:[#allocation5] sm:$0xff] }
   0xe   :  { %71 = vmatpush.msra.mxu0 %v52_v1  ;;  %v45_v8 = vld [vmem:[#allocation2] sm:$0xff] }
   0xf   :  { %v124_v9 = vld [vmem:[%s248_s2] ss:$0 sm:$0xff]  ;;  %s213_s2 = smov [#allocation7]  }
  0x10   :  { %72 = vmatpush.msra.mxu0 %v51_v2  ;;  %s105_s24 = sshll.u32 %s213_s2, 4  ;;  %s106_s24 = int_to_ptr.vmem [resolvable:$true] %s105_s24 }
  0x12   :  { %73 = vmatpush.msra.mxu0 %v50_v3 }
  0x14   :  { %74 = vmatpush.msra.mxu0 %v49_v4 }
  0x16   :  { %75 = vmatpush.msra.mxu0 %v48_v5 }
  0x18   :  { %76 = vmatpush.msra.mxu0 %v47_v6 }
  0x1a   :  { %77 = vmatpush.msra.mxu0 %v46_v7 }
  0x1b   :  { %118 = vmatmul.msk.f32.vlgmr.msra.gmra.mxu0 %vm58_vm0, %v45_v8 }
  0x98   :  { %v79_v10 = vpop.f32.mrf.mxu0 }
  0x99   :  { %v80_v11 = vadd.f32 %v124_v9, %v79_v10 }
  0x9b   :  { %v82_v12 = vsub.f32 0.0, %v80_v11 }
  0x9d   :  { %v83_v13 = vmul.f32 1.442695, %v82_v12 }
  0x9f   :  { %125 = vpow2.f32 %v83_v13 }
  0xa5   :  { %v126_v14 = vpop.eup %125 }
  0xa6   :  { %v85_v15 = vadd.f32 1.0, %v126_v14  ;;  %v88_v16 = vmul.f32 -0.5, %v126_v14  ;;  %v91_v18 = vand.u32 2147483647, %v126_v14 }
  0xa8   :  { %127 = vlog2.f32 %v85_v15  ;;  %v89_v17 = vadd.f32 1.0, %v88_v16  ;;  %vm92_vm1 = vcmp.lt.f32.partialorder %v91_v18, 0.0004427343 }
  0xaa   :  { %v90_v21 = vmul.f32 %v126_v14, %v89_v17 }
  0xae   :  { %v128_v19 = vpop.eup %127 }
  0xaf   :  { %v87_v20 = vmul.f32 0.6931472, %v128_v19 }
  0xb1   :  { %v93_v22 = vsel %vm92_vm1, %v90_v21, %v87_v20 }
  0xb2   :  { %v94_v23 = vmul.f32 -2.3025851, %v93_v22 }
  0xb4   :  { %v95_v24 = vmul.f32 1.442695, %v94_v23 }
  0xb6   :  { %129 = vpow2.f32 %v95_v24 }
  0xbc   :  { %v130_v25 = vpop.eup %129 }
  0xbd   :  { %v97_v26 = vmul.f32 2.0, %v130_v25 }
  0xbf   :  { %v98_v27 = vadd.f32 1e-07, %v97_v26 }
  0xc1   :  { %99 = vst [vmem:[#allocation7] sm:$0xff] %v98_v27 }
  0xc2   :  { %110 = dma.vmem_to_hbm [thread:$0]  %s106_s24, 128, %s108_s27, [#allocation4]  }
  0xc3   :  { %207 = dma.done.wait [#allocation4], 128  }
  0xc4   :  { %208 = vsyncadd [#allocation4], 4294967168 }
  0xc5   :  { %115 = vsyncpa [#allocation3], 1 }
  0xc6   :  { %116 = vsyncpa [#allocation6], 1 }
  0xc7   :  { %117 = vsyncpa [#allocation4], 1 }

</bundles_post_ra>
